<compile_context>
chip_gen: v7x
topology: tpu7x:2x2x1
jax: 0.10.0
libtpu: 0.0.40
codegen_flags: <defaults>
</compile_context>

<pallas_src>
import jax
import jax.numpy as jnp
from jax.experimental import pallas as pl
from jax.experimental.pallas import tpu as pltpu

_LANES = 128
_TARGET_TILE_BYTES = 4 << 20  # ~4 MiB/block; x4 resident (in+out, double-buffered)


def _copy_kernel(x_ref, o_ref):
    # Pure identity: one full-tile vector copy per grid step.
    o_ref[...] = x_ref[...]


def _lane_dense_view(shape):
    """Pick a (rows, cols) 2-D view of the flat array with cols lane-dense."""
    n = 1
    for s in shape:
        n *= s
    if n % _LANES == 0:
        cols = _LANES
        # Widen the lane dim while it stays divisible and we keep >= 8 rows
        # for clean (8, 128) sublane tiling.
        while cols * 2 <= 2048 and n % (cols * 2) == 0 and n // (cols * 2) >= 8:
            cols *= 2
        return n // cols, cols
    # Fallback: keep the original last dim as lanes (a full-extent last dim is
    # a legal block even when it is not a multiple of 128).
    cols = shape[-1]
    return n // cols, cols


def _sublane_multiple(itemsize):
    # Sub-32-bit dtypes pack along sublanes: 8 rows for 32-bit, 16 for 16-bit,
    # 32 for 8-bit. Keep row tiles aligned to the packed sublane count.
    return 8 * max(1, 4 // itemsize)


def _choose_tile_rows(rows, cols, itemsize):
    """Largest sublane-aligned row-tile <= ~_TARGET_TILE_BYTES."""
    m = _sublane_multiple(itemsize)
    if rows <= m:
        return rows  # full extent: always a legal block shape
    row_bytes = max(cols * itemsize, 1)
    t = min(rows, max(m, _TARGET_TILE_BYTES // row_bytes))
    t = (t // m) * m
    if t >= rows:
        return rows
    return max(t, m)


def no_pool(x, *, use_pallas=True):
    """JAX/Pallas equivalent of NoPool.forward: identity."""
    if not use_pallas:
        return x  # what production code should do: a literal no-op.

    orig_shape = x.shape
    rows, cols = _lane_dense_view(orig_shape)
    x2 = x.reshape(rows, cols)  # contiguous reshape: free in XLA

    tile_rows = _choose_tile_rows(rows, cols, jnp.dtype(x.dtype).itemsize)
    grid = (pl.cdiv(rows, tile_rows),)

    out2 = pl.pallas_call(
        _copy_kernel,
        out_shape=jax.ShapeDtypeStruct((rows, cols), x.dtype),
        grid_spec=pltpu.PrefetchScalarGridSpec(
            num_scalar_prefetch=0,
            grid=grid,
            in_specs=[pl.BlockSpec((tile_rows, cols), lambda i: (i, 0))],
            out_specs=pl.BlockSpec((tile_rows, cols), lambda i: (i, 0)),
        ),
        compiler_params=pltpu.CompilerParams(
            dimension_semantics=("parallel",),
            vmem_limit_bytes=32 << 20,
        ),
    )(x2)
    return out2.reshape(orig_shape)


class NoPool:
    """Mirror of the PyTorch module: __init__ args are ignored, forward is identity."""

    def __init__(self, dim=None, pool_size=2, padding="same"):
        del dim, pool_size, padding

    def __call__(self, x):
        return no_pool(x)


if __name__ == "__main__":
    key = jax.random.PRNGKey(0)

    # Shapes consistent with how NoPool is used: (batch, seq, hidden).
    batch, seq, dim = 2, 16, 32
    x = jax.random.normal(key, (batch, seq, dim), dtype=jnp.float32)

    mod = NoPool(dim=dim, pool_size=2, padding="same")
    y = jax.block_until_ready(mod(x))
    assert y.shape == x.shape and y.dtype == x.dtype
    assert jnp.array_equal(y, x), "identity copy mismatch (lane-dense path)"

    # Exercise the multi-block + ragged-tail path (rows=15, tile=8, grid=2).
    x_tail = jax.random.normal(jax.random.PRNGKey(1), (3, 40, 32), dtype=jnp.float32)
    y_tail = jax.block_until_ready(no_pool(x_tail))
    assert jnp.array_equal(y_tail, x_tail), "identity copy mismatch (tail path)"

    # Exercise the non-lane-dense fallback path (last dim not /128, bf16).
    x_odd = jax.random.normal(jax.random.PRNGKey(2), (2, 5, 7), dtype=jnp.bfloat16)
    y_odd = jax.block_until_ready(no_pool(x_odd))
    assert jnp.array_equal(y_odd, x_odd), "identity copy mismatch (fallback path)"

    print("KERNEL_OK")
</pallas_src>

<mosaic_0001>
module attributes {stable_mosaic.version = 11 : i64} {
  func.func @_copy_kernel(%arg0: i32, %arg1: memref<8x128xf32, #tpu.memory_space<vmem>>, %arg2: memref<8x128xf32, #tpu.memory_space<vmem>>) attributes {dimension_semantics = [#tpu.dimension_semantics<parallel>], iteration_bounds = array<i64: 1>, scalar_prefetch = 0 : i64, scratch_operands = 0 : i64, tpu.core_type = #tpu.core_type<tc>, window_params = [{transform_indices = @transform_0, window_bounds = array<i64: 8, 128>}, {transform_indices = @transform_1, window_bounds = array<i64: 8, 128>}]} {
    %c0 = arith.constant 0 : index
    %c0_0 = arith.constant 0 : index
    %0 = vector.load %arg1[%c0, %c0_0] : memref<8x128xf32, #tpu.memory_space<vmem>>, vector<8x128xf32>
    %c0_1 = arith.constant 0 : index
    %c0_2 = arith.constant 0 : index
    %1 = vector.load %arg2[%c0_1, %c0_2] : memref<8x128xf32, #tpu.memory_space<vmem>>, vector<8x128xf32>
    tpu.vector_store %arg2[%c0_1, %c0_2], %0 {strides = array<i32>} : memref<8x128xf32, #tpu.memory_space<vmem>>, vector<8x128xf32>,
    return
  }
  func.func @transform_0(%arg0: i32) -> (i32, i32) {
    %c0_i32 = arith.constant 0 : i32
    %c0_i32_0 = arith.constant 0 : i32
    return %arg0, %c0_i32 : i32, i32
  }
  func.func @transform_1(%arg0: i32) -> (i32, i32) {
    %c0_i32 = arith.constant 0 : i32
    %c0_i32_0 = arith.constant 0 : i32
    return %arg0, %c0_i32 : i32, i32
  }
}

</mosaic_0001>

<bundles_post_ra>
// kernel: tpu_custom_call.1
= control target key start
LH: loop header
LB: loop body
LE: loop exit
PB: predicated region body
PF: predicated region fallthrough
CT: control target
= control target key end

     0   :  { %6 = vsyncpa [#allocation3], 0  ;;  %s124_s0 = inlined_call_operand.hbm [shape: f32[8,128], index: 0, kind: input, shape index: {}]   ;;  %s125_s1 = inlined_call_operand.hbm [shape: f32[8,128], index: 1, kind: output, shape index: {}]  }
   0x1   :  { %7 = vsyncpa [#allocation4], 0  ;;  %s88_s6 = smov [#allocation2]   ;;  %s40_s10 = scalar_lea.hbm %s124_s0, 128 }
   0x2   :  { %s14_s7 = sshll.u32 %s88_s6, 4  ;;  %p41_p0 = scmp.ne.s32.totalorder %s124_s0, %s40_s10  ;;  %s15_s7 = int_to_ptr.vmem [resolvable:$true] %s14_s7 }
   0x3   :  { %p44_p1 = scmp.lt.u32.totalorder %s40_s10, %s124_s0 }
   0x5   :  { %p46_p2 = pnand %p44_p1, %p41_p0 }
   0x7   :  { %49 = shalt.err (!%p46_p2)
}
   0x8   :  { %s50_s15 = scalar_lea.vmem %s15_s7, 128  ;;  %p55_p4 = scmp.lt.s32.totalorder %s15_s7, %s15_s7 }
   0x9   :  { %p51_p3 = scmp.ne.s32.totalorder %s15_s7, %s50_s15  ;;  %p56_p5 = scmp.lt.s32.totalorder %s50_s15, %s50_s15 }
   0xb   :  { %p57_p6 = por %p56_p5, %p55_p4 }
   0xd   :  { %p58_p7 = pnand %p57_p6, %p51_p3 }
   0xf   :  { %61 = shalt.err (!%p58_p7)
}
  0x10   :  { %17 = dma.hbm_to_vmem [thread:$0]  %s124_s0, 128, %s15_s7, [#allocation3]  }
  0x11   :  { %84 = dma.done.wait [#allocation3], 128  }
  0x12   :  { %85 = vsyncadd [#allocation3], 4294967168  ;;  %s89_s18 = smov [#allocation5]   ;;  %v21_v0 = vld [vmem:[#allocation2] sm:$0xff] }
  0x13   :  { %s29_s19 = sshll.u32 %s89_s18, 4  ;;  %22 = vst [vmem:[#allocation5] sm:$0xff] %v21_v0  ;;  %s30_s19 = int_to_ptr.vmem [resolvable:$true] %s29_s19 }
  0x14   :  { %s62_s20 = scalar_lea.vmem %s30_s19, 128  ;;  %p67_p9 = scmp.lt.s32.totalorder %s30_s19, %s30_s19 }
  0x15   :  { %p63_p8 = scmp.ne.s32.totalorder %s30_s19, %s62_s20  ;;  %p68_p10 = scmp.lt.s32.totalorder %s62_s20, %s62_s20 }
  0x17   :  { %p69_p11 = por %p68_p10, %p67_p9 }
  0x19   :  { %p70_p12 = pnand %p69_p11, %p63_p8 }
  0x1b   :  { %73 = shalt.err (!%p70_p12)
}
  0x1c   :  { %s74_s23 = scalar_lea.hbm %s125_s1, 128 }
  0x1d   :  { %p75_p13 = scmp.ne.s32.totalorder %s125_s1, %s74_s23  ;;  %p78_p0 = scmp.lt.u32.totalorder %s74_s23, %s125_s1 }
  0x1f   :  { %p80_p1 = pnand %p78_p0, %p75_p13 }
  0x21   :  { %83 = shalt.err (!%p80_p1)
}
  0x22   :  { %32 = dma.vmem_to_hbm [thread:$0]  %s30_s19, 128, %s125_s1, [#allocation4]  }
  0x23   :  { %86 = dma.done.wait [#allocation4], 128  }
  0x24   :  { %87 = vsyncadd [#allocation4], 4294967168 }
  0x25   :  { %36 = vsyncpa [#allocation3], 1 }
  0x26   :  { %37 = vsyncpa [#allocation4], 1 }

</bundles_post_ra>
